<compile_context>
chip_gen: v5e
topology: v5e:2x2
jax: 0.10.0
libtpu: 0.0.40
codegen_flags: <defaults>
</compile_context>

<pallas_src>
import functools

import jax
import jax.numpy as jnp
from jax.experimental import pallas as pl
from jax.experimental.pallas import tpu as pltpu


def _round_up(x, m):
    return ((x + m - 1) // m) * m


def _cdiv(a, b):
    return (a + b - 1) // b


def _pick_vmem_budget():
    """(per-step input tile budget, vmem_limit_bytes) picked per generation."""
    cap = None
    try:
        info = pltpu.get_tpu_info()
        cap = getattr(info, "vmem_capacity_bytes", None)
    except Exception:
        cap = None
    if cap is not None and cap >= 100 * 1024 * 1024:
        # v5e / v6e: 128 MiB physical VMEM -> large streaming tiles.
        return 24 * 1024 * 1024, 64 * 1024 * 1024
    # v7x (64 MiB per TC) or unknown chip: stay conservative.
    return 12 * 1024 * 1024, 32 * 1024 * 1024


def _loss_kernel(a_ref, b_ref, t_ref, gx_ref, gy_ref, mel_ref, gate_ref,
                 acc_ref, *, total_rows, row_tile, mask_tail):
    i = pl.program_id(0)

    @pl.when(i == 0)
    def _():
        # Reset the (8, L) vector accumulator.
        acc_ref[...] = jnp.zeros_like(acc_ref)
        # Gate BCE-with-logits (tiny, VMEM-resident), stable form:
        #   max(x, 0) - x*y + log1p(exp(-|x|)); summed here, mean in wrapper.
        x = gx_ref[...].astype(jnp.float32)
        y = gy_ref[...].astype(jnp.float32)
        bce = jnp.maximum(x, 0.0) - x * y + jnp.log1p(jnp.exp(-jnp.abs(x)))
        gate_ref[...] = jnp.zeros(gate_ref.shape, jnp.float32) + jnp.sum(bce)

    # Streaming squared-error: one combined elementwise update per step.
    tgt = t_ref[...].astype(jnp.float32)
    d1 = a_ref[...].astype(jnp.float32) - tgt
    d2 = b_ref[...].astype(jnp.float32) - tgt
    sq = d1 * d1 + d2 * d2

    if mask_tail:
        # Zero contributions from rows past the true array extent (the last,
        # partial block's VMEM buffer holds unspecified data there).
        row_ids = i * row_tile + jax.lax.broadcasted_iota(jnp.int32, sq.shape, 0)
        sq = jnp.where(row_ids < total_rows, sq, 0.0)

    # Fold the (row_tile, L) tile into the (8, L) accumulator with pure VPU
    # adds over sublane groups -- no per-step cross-lane reduction.
    groups = row_tile // 8
    acc_ref[...] += jnp.sum(sq.reshape(groups, 8, sq.shape[1]), axis=0)

    @pl.when(i == pl.num_programs(0) - 1)
    def _():
        # One-time epilogue cross-lane reduction; broadcast the scalar over the
        # (8, 128) output block so the store stays a full, unmasked vector store.
        mel_ref[...] = jnp.zeros(mel_ref.shape, jnp.float32) + jnp.sum(acc_ref[...])


def tacotron2_loss(model_output, targets):
    mel_out, mel_out_postnet, gate_out, _ = model_output
    mel_target, gate_target = targets

    B, C, T = mel_out.shape
    n_elems = B * C * T

    # Lane-dense flat view when it is a free contiguous reshape; otherwise the
    # natural (B*C, T) view.  No HBM padding copies in either case.
    if n_elems % 128 == 0:
        rows, L = n_elems // 128, 128
    else:
        rows, L = B * C, T
    a = mel_out.reshape(rows, L)
    b = mel_out_postnet.reshape(rows, L)
    t = mel_target.reshape(rows, L)

    gx = gate_out.reshape(-1)
    gy = gate_target.reshape(-1)
    n_gate = gx.shape[0]
    gate_shape = (8, n_gate // 8) if n_gate % 8 == 0 else (1, n_gate)
    gx = gx.reshape(gate_shape)
    gy = gy.reshape(gate_shape)

    # --- choose the row tile from a dtype-aware VMEM budget ------------------
    vmem_budget, vmem_limit = _pick_vmem_budget()
    # Double-buffered footprint of the three streamed inputs, per row.
    bytes_per_row = L * 2 * (a.dtype.itemsize + b.dtype.itemsize + t.dtype.itemsize)
    row_tile = max(8, (vmem_budget // bytes_per_row) // 8 * 8)
    row_tile = min(row_tile, _round_up(rows, 8))

    num_blocks = _cdiv(rows, row_tile)
    mask_tail = (rows % row_tile) != 0

    kernel = functools.partial(
        _loss_kernel, total_rows=rows, row_tile=row_tile, mask_tail=mask_tail)

    mel_sum, gate_sum = pl.pallas_call(
        kernel,
        out_shape=(
            jax.ShapeDtypeStruct((8, 128), jnp.float32),
            jax.ShapeDtypeStruct((8, 128), jnp.float32),
        ),
        grid_spec=pltpu.PrefetchScalarGridSpec(
            num_scalar_prefetch=0,
            grid=(num_blocks,),
            in_specs=[
                pl.BlockSpec((row_tile, L), lambda i: (i, 0)),
                pl.BlockSpec((row_tile, L), lambda i: (i, 0)),
                pl.BlockSpec((row_tile, L), lambda i: (i, 0)),
                pl.BlockSpec(gate_shape, lambda i: (0, 0)),
                pl.BlockSpec(gate_shape, lambda i: (0, 0)),
            ],
            out_specs=[
                pl.BlockSpec((8, 128), lambda i: (0, 0)),
                pl.BlockSpec((8, 128), lambda i: (0, 0)),
            ],
            scratch_shapes=[pltpu.VMEM((8, L), jnp.float32)],
        ),
        compiler_params=pltpu.CompilerParams(
            dimension_semantics=("arbitrary",),
            vmem_limit_bytes=vmem_limit,
        ),
    )(a, b, t, gx, gy)

    mel_loss = mel_sum[0, 0] / float(n_elems)
    gate_loss = gate_sum[0, 0] / float(n_gate)
    return mel_loss, gate_loss


def _reference(model_output, targets):
    mel_out, mel_post, gate_out, _ = model_output
    mel_target, gate_target = targets
    mel_loss = jnp.mean((mel_out - mel_target) ** 2) + jnp.mean((mel_post - mel_target) ** 2)
    x = gate_out.reshape(-1, 1)
    y = gate_target.reshape(-1, 1)
    gate_loss = jnp.mean(jnp.maximum(x, 0.0) - x * y + jnp.log1p(jnp.exp(-jnp.abs(x))))
    return mel_loss, gate_loss


if __name__ == "__main__":
    key = jax.random.PRNGKey(0)
    B, C, T = 2, 8, 128  # batch, n_mel_channels, decoder steps

    k = jax.random.split(key, 5)
    mel_out = jax.random.normal(k[0], (B, C, T), dtype=jnp.float32)
    mel_out_postnet = jax.random.normal(k[1], (B, C, T), dtype=jnp.float32)
    gate_out = jax.random.normal(k[2], (B, T), dtype=jnp.float32)
    mel_target = jax.random.normal(k[3], (B, C, T), dtype=jnp.float32)
    gate_target = jax.random.bernoulli(k[4], 0.3, (B, T)).astype(jnp.float32)

    model_output = (mel_out, mel_out_postnet, gate_out, None)
    targets = (mel_target, gate_target)

    mel_loss, gate_loss = tacotron2_loss(model_output, targets)
    jax.block_until_ready((mel_loss, gate_loss))

    ref_mel, ref_gate = _reference(model_output, targets)
    assert jnp.allclose(mel_loss, ref_mel, rtol=1e-5, atol=1e-5), (mel_loss, ref_mel)
    assert jnp.allclose(gate_loss, ref_gate, rtol=1e-5, atol=1e-5), (gate_loss, ref_gate)

    print("KERNEL_OK")
</pallas_src>

<mosaic_0001>
module attributes {stable_mosaic.version = 11 : i64} {
  func.func @_loss_kernel(%arg0: i32, %arg1: memref<16x128xf32, #tpu.memory_space<vmem>>, %arg2: memref<16x128xf32, #tpu.memory_space<vmem>>, %arg3: memref<16x128xf32, #tpu.memory_space<vmem>>, %arg4: memref<8x32xf32, #tpu.memory_space<vmem>>, %arg5: memref<8x32xf32, #tpu.memory_space<vmem>>, %arg6: memref<8x128xf32, #tpu.memory_space<vmem>>, %arg7: memref<8x128xf32, #tpu.memory_space<vmem>>, %arg8: memref<8x128xf32, #tpu.memory_space<vmem>>) attributes {dimension_semantics = [#tpu.dimension_semantics<arbitrary>], iteration_bounds = array<i64: 1>, scalar_prefetch = 0 : i64, scratch_operands = 1 : i64, tpu.core_type = #tpu.core_type<tc>, window_params = [{transform_indices = @transform_0, window_bounds = array<i64: 16, 128>}, {transform_indices = @transform_1, window_bounds = array<i64: 16, 128>}, {transform_indices = @transform_2, window_bounds = array<i64: 16, 128>}, {pipeline_mode = #tpu.pipeline_mode<synchronous>, transform_indices = @transform_3, window_bounds = array<i64: 8, 32>}, {pipeline_mode = #tpu.pipeline_mode<synchronous>, transform_indices = @transform_4, window_bounds = array<i64: 8, 32>}, {pipeline_mode = #tpu.pipeline_mode<synchronous>, transform_indices = @transform_5, window_bounds = array<i64: 8, 128>}, {pipeline_mode = #tpu.pipeline_mode<synchronous>, transform_indices = @transform_6, window_bounds = array<i64: 8, 128>}]} {
    %c0_i32 = arith.constant 0 : i32
    %0 = arith.cmpi eq, %arg0, %c0_i32 : i32
    %1 = arith.extui %0 : i1 to i32
    %c0_i32_0 = arith.constant 0 : i32
    %2 = arith.cmpi ne, %1, %c0_i32_0 : i32
    scf.if %2 {
      %cst_12 = arith.constant 0.000000e+00 : f32
      %19 = vector.broadcast %cst_12 : f32 to vector<8x128xf32>
      %c0_13 = arith.constant 0 : index
      %c0_14 = arith.constant 0 : index
      %20 = vector.load %arg8[%c0_13, %c0_14] : memref<8x128xf32, #tpu.memory_space<vmem>>, vector<8x128xf32>
      tpu.vector_store %arg8[%c0_13, %c0_14], %19 {strides = array<i32>} : memref<8x128xf32, #tpu.memory_space<vmem>>, vector<8x128xf32>,
      %c0_15 = arith.constant 0 : index
      %c0_16 = arith.constant 0 : index
      %21 = vector.load %arg4[%c0_15, %c0_16] : memref<8x32xf32, #tpu.memory_space<vmem>>, vector<8x32xf32>
      %c0_17 = arith.constant 0 : index
      %c0_18 = arith.constant 0 : index
      %22 = vector.load %arg5[%c0_17, %c0_18] : memref<8x32xf32, #tpu.memory_space<vmem>>, vector<8x32xf32>
      %cst_19 = arith.constant 0.000000e+00 : f32
      %23 = vector.broadcast %cst_19 : f32 to vector<8x32xf32>
      %24 = arith.maximumf %21, %23 : vector<8x32xf32>
      %25 = arith.mulf %21, %22 : vector<8x32xf32>
      %26 = arith.subf %24, %25 : vector<8x32xf32>
      %27 = math.absf %21 : vector<8x32xf32>
      %cst_20 = arith.constant 0.000000e+00 : f32
      %28 = vector.broadcast %cst_20 : f32 to vector<8x32xf32>
      %29 = arith.subf %28, %27 : vector<8x32xf32>
      %30 = math.exp %29 : vector<8x32xf32>
      %31 = math.log1p %30 : vector<8x32xf32>
      %32 = arith.addf %26, %31 : vector<8x32xf32>
      %cst_21 = arith.constant 0.000000e+00 : f32
      %33 = vector.broadcast %cst_21 : f32 to vector<8x128xf32>
      %34 = vector.shape_cast %32 : vector<8x32xf32> to vector<1x8x32xf32>
      %cst_22 = arith.constant dense<0.000000e+00> : vector<1xf32>
      %35 = vector.multi_reduction <add>, %34, %cst_22 [1, 2] : vector<1x8x32xf32> to vector<1xf32>
      %36 = vector.shape_cast %35 : vector<1xf32> to vector<1x1x1xf32>
      %37 = vector.extract %36[0, 0, 0] : f32 from vector<1x1x1xf32>
      %38 = vector.broadcast %37 : f32 to vector<8x128xf32>
      %39 = arith.addf %33, %38 : vector<8x128xf32>
      %c0_23 = arith.constant 0 : index
      %c0_24 = arith.constant 0 : index
      %40 = vector.load %arg7[%c0_23, %c0_24] : memref<8x128xf32, #tpu.memory_space<vmem>>, vector<8x128xf32>
      tpu.vector_store %arg7[%c0_23, %c0_24], %39 {strides = array<i32>} : memref<8x128xf32, #tpu.memory_space<vmem>>, vector<8x128xf32>,
    } else {
    }
    %c0 = arith.constant 0 : index
    %c0_1 = arith.constant 0 : index
    %3 = vector.load %arg3[%c0, %c0_1] : memref<16x128xf32, #tpu.memory_space<vmem>>, vector<16x128xf32>
    %c0_2 = arith.constant 0 : index
    %c0_3 = arith.constant 0 : index
    %4 = vector.load %arg1[%c0_2, %c0_3] : memref<16x128xf32, #tpu.memory_space<vmem>>, vector<16x128xf32>
    %5 = arith.subf %4, %3 : vector<16x128xf32>
    %c0_4 = arith.constant 0 : index
    %c0_5 = arith.constant 0 : index
    %6 = vector.load %arg2[%c0_4, %c0_5] : memref<16x128xf32, #tpu.memory_space<vmem>>, vector<16x128xf32>
    %7 = arith.subf %6, %3 : vector<16x128xf32>
    %8 = arith.mulf %5, %5 : vector<16x128xf32>
    %9 = arith.mulf %7, %7 : vector<16x128xf32>
    %10 = arith.addf %8, %9 : vector<16x128xf32>
    %c0_6 = arith.constant 0 : index
    %c0_7 = arith.constant 0 : index
    %11 = vector.load %arg8[%c0_6, %c0_7] : memref<8x128xf32, #tpu.memory_space<vmem>>, vector<8x128xf32>
    %12 = vector.shape_cast %10 : vector<16x128xf32> to vector<2x8x128xf32>
    %cst = arith.constant dense<0.000000e+00> : vector<8x128xf32>
    %13 = vector.multi_reduction <add>, %12, %cst [0] : vector<2x8x128xf32> to vector<8x128xf32>
    %14 = arith.addf %11, %13 : vector<8x128xf32>
    %c0_8 = arith.constant 0 : index
    %c0_9 = arith.constant 0 : index
    %15 = vector.load %arg8[%c0_8, %c0_9] : memref<8x128xf32, #tpu.memory_space<vmem>>, vector<8x128xf32>
    tpu.vector_store %arg8[%c0_8, %c0_9], %14 {strides = array<i32>} : memref<8x128xf32, #tpu.memory_space<vmem>>, vector<8x128xf32>,
    %c0_i32_10 = arith.constant 0 : i32
    %16 = arith.cmpi eq, %arg0, %c0_i32_10 : i32
    %17 = arith.extui %16 : i1 to i32
    %c0_i32_11 = arith.constant 0 : i32
    %18 = arith.cmpi ne, %17, %c0_i32_11 : i32
    scf.if %18 {
      %cst_12 = arith.constant 0.000000e+00 : f32
      %19 = vector.broadcast %cst_12 : f32 to vector<8x128xf32>
      %c0_13 = arith.constant 0 : index
      %c0_14 = arith.constant 0 : index
      %20 = vector.load %arg8[%c0_13, %c0_14] : memref<8x128xf32, #tpu.memory_space<vmem>>, vector<8x128xf32>
      %21 = vector.shape_cast %20 : vector<8x128xf32> to vector<1x8x128xf32>
      %cst_15 = arith.constant dense<0.000000e+00> : vector<1xf32>
      %22 = vector.multi_reduction <add>, %21, %cst_15 [1, 2] : vector<1x8x128xf32> to vector<1xf32>
      %23 = vector.shape_cast %22 : vector<1xf32> to vector<1x1x1xf32>
      %24 = vector.extract %23[0, 0, 0] : f32 from vector<1x1x1xf32>
      %25 = vector.broadcast %24 : f32 to vector<8x128xf32>
      %26 = arith.addf %19, %25 : vector<8x128xf32>
      %c0_16 = arith.constant 0 : index
      %c0_17 = arith.constant 0 : index
      %27 = vector.load %arg6[%c0_16, %c0_17] : memref<8x128xf32, #tpu.memory_space<vmem>>, vector<8x128xf32>
      tpu.vector_store %arg6[%c0_16, %c0_17], %26 {strides = array<i32>} : memref<8x128xf32, #tpu.memory_space<vmem>>, vector<8x128xf32>,
    } else {
    }
    return
  }
  func.func @transform_0(%arg0: i32) -> (i32, i32) {
    %c0_i32 = arith.constant 0 : i32
    %c0_i32_0 = arith.constant 0 : i32
    return %arg0, %c0_i32 : i32, i32
  }
  func.func @transform_1(%arg0: i32) -> (i32, i32) {
    %c0_i32 = arith.constant 0 : i32
    %c0_i32_0 = arith.constant 0 : i32
    return %arg0, %c0_i32 : i32, i32
  }
  func.func @transform_2(%arg0: i32) -> (i32, i32) {
    %c0_i32 = arith.constant 0 : i32
    %c0_i32_0 = arith.constant 0 : i32
    return %arg0, %c0_i32 : i32, i32
  }
  func.func @transform_3(%arg0: i32) -> (i32, i32) {
    %c0_i32 = arith.constant 0 : i32
    %c0_i32_0 = arith.constant 0 : i32
    %c0_i32_1 = arith.constant 0 : i32
    return %c0_i32, %c0_i32_0 : i32, i32
  }
  func.func @transform_4(%arg0: i32) -> (i32, i32) {
    %c0_i32 = arith.constant 0 : i32
    %c0_i32_0 = arith.constant 0 : i32
    %c0_i32_1 = arith.constant 0 : i32
    return %c0_i32, %c0_i32_0 : i32, i32
  }
  func.func @transform_5(%arg0: i32) -> (i32, i32) {
    %c0_i32 = arith.constant 0 : i32
    %c0_i32_0 = arith.constant 0 : i32
    %c0_i32_1 = arith.constant 0 : i32
    return %c0_i32, %c0_i32_0 : i32, i32
  }
  func.func @transform_6(%arg0: i32) -> (i32, i32) {
    %c0_i32 = arith.constant 0 : i32
    %c0_i32_0 = arith.constant 0 : i32
    %c0_i32_1 = arith.constant 0 : i32
    return %c0_i32, %c0_i32_0 : i32, i32
  }
}

</mosaic_0001>

<bundles_post_ra>
// kernel: tpu_custom_call.1
= control target key start
LH: loop header
LB: loop body
LE: loop exit
PB: predicated region body
PF: predicated region fallthrough
CT: control target
= control target key end

     0   :  { %12 = vsyncpa [#allocation4], 0  ;;  %s467_s0 = inlined_call_operand.hbm [shape: f32[16,128], index: 0, kind: input, shape index: {}]   ;;  %s468_s1 = inlined_call_operand.hbm [shape: f32[16,128], index: 1, kind: input, shape index: {}]   ;;  %s469_s2 = inlined_call_operand.hbm [shape: f32[16,128], index: 2, kind: input, shape index: {}]   ;;  %s470_s3 = inlined_call_operand.hbm [shape: f32[8,32], index: 3, kind: input, shape index: {}]   ;;  %s471_s4 = inlined_call_operand.hbm [shape: f32[8,32], index: 4, kind: input, shape index: {}]   ;;  %s472_s5 = inlined_call_operand.hbm [shape: f32[8,128], index: 5, kind: output, shape index: {0}]   ;;  %s473_s6 = inlined_call_operand.hbm [shape: f32[8,128], index: 6, kind: output, shape index: {1}]  }
   0x1   :  { %13 = vsyncpa [#allocation7], 0 }
   0x2   :  { %14 = vsyncpa [#allocation10], 0 }
   0x3   :  { %15 = vsyncpa [#allocation5], 0 }
   0x4   :  { %16 = vsyncpa [#allocation14], 0  ;;  %s34_s23 = sshll.u32 %s468_s1, 4  ;;  %s402_s24 = smov [#allocation6]   ;;  %s35_s23 = int_to_ptr.hbm [resolvable:$true] %s34_s23 }
   0x5   :  { %s36_s25 = sshll.u32 %s402_s24, 4  ;;  %s61_s28 = sshll.u32 %s470_s3, 4  ;;  %s37_s25 = int_to_ptr.vmem [resolvable:$true] %s36_s25  ;;  %s62_s28 = int_to_ptr.hbm [resolvable:$true] %s61_s28 }
   0x6   :  { %s403_s29 = smov 128   ;;  %s404_s30 = smov 8  }
   0x7   :  { %42 = dma.hbm_to_vmem [thread:$0]  %s35_s23, 256, %s37_s25, [#allocation7], %s403_s29, %s403_s29, %s404_s30  }
   0x8   :  { %s405_s7 = smov [#allocation9]   ;;  %s21_s11 = sshll.u32 %s467_s0, 4  ;;  %s22_s11 = int_to_ptr.hbm [resolvable:$true] %s21_s11 }
   0x9   :  { %s63_s8 = sshll.u32 %s405_s7, 4  ;;  %s47_s13 = sshll.u32 %s469_s2, 4  ;;  %s64_s8 = int_to_ptr.vmem [resolvable:$true] %s63_s8  ;;  %s48_s13 = int_to_ptr.hbm [resolvable:$true] %s47_s13 }
   0xa   :  { %66 = dma.hbm_to_vmem [thread:$0]  %s62_s28, 128, %s64_s8, [#allocation10]  }
   0xb   :  { %s406_s14 = smov [#allocation3]   ;;  %s407_s3 = smov [#allocation8]  }
   0xc   :  { %s23_s15 = sshll.u32 %s406_s14, 4  ;;  %s49_s16 = sshll.u32 %s407_s3, 4  ;;  %s24_s15 = int_to_ptr.vmem [resolvable:$true] %s23_s15  ;;  %s50_s16 = int_to_ptr.vmem [resolvable:$true] %s49_s16 }
   0xd   :  { %29 = dma.hbm_to_vmem [thread:$0]  %s22_s11, 256, %s24_s15, [#allocation4], %s403_s29, %s403_s29, %s404_s30  }
   0xe   :  { %s72_s19 = sshll.u32 %s471_s4, 4  ;;  %s408_s0 = smov [#allocation11]   ;;  %s73_s19 = int_to_ptr.hbm [resolvable:$true] %s72_s19 }
   0xf   :  { %55 = dma.hbm_to_vmem [thread:$0]  %s48_s13, 256, %s50_s16, [#allocation7], %s403_s29, %s403_s29, %s404_s30  }
  0x10   :  { %s74_s20 = sshll.u32 %s408_s0, 4  ;;  %s75_s20 = int_to_ptr.vmem [resolvable:$true] %s74_s20 }
  0x11   :  { %77 = dma.hbm_to_vmem [thread:$0]  %s73_s19, 128, %s75_s20, [#allocation10]  }
  0x12   :  { %392 = dma.done.wait [#allocation4], 256  }
  0x13   :  { %393 = vsyncadd [#allocation4], 4294967040 }
  0x14   :  { %394 = dma.done.wait [#allocation7], 512  }
  0x15   :  { %395 = vsyncadd [#allocation7], 4294966784 }
  0x16   :  { %396 = dma.done.wait [#allocation10], 256  }
  0x17   :  { %397 = vsyncadd [#allocation10], 4294967040  ;;  %v103_v0 = vld [vmem:[#allocation9] sm:$0xff]  ;;  %v104_v7 = vld [vmem:[#allocation11] sm:$0xff]  ;;  %vm122_vm1 = vcmask 261120   ;;  %s409_s2 = smov [#allocation13]  }
  0x18   :  { %v108_v1 = vand.u32 2147483647, %v103_v0  ;;  %v136_v9 = vld [vmem:[#allocation8] sm:$0xff]  ;;  %v137_v10 = vld [vmem:[#allocation8 + $0x8] sm:$0xff]  ;;  %v105_v12 = vmax.f32 %v103_v0, 0.0  ;;  %v106_v13 = vmul.f32 %v104_v7, %v103_v0  ;;  %v142_v16 = vld [vmem:[#allocation6] sm:$0xff] }
  0x19   :  { %v138_v11 = vld [vmem:[#allocation3] sm:$0xff]  ;;  %v139_v15 = vld [vmem:[#allocation3 + $0x8] sm:$0xff]  ;;  %v143_v17 = vld [vmem:[#allocation6 + $0x8] sm:$0xff]  ;;  %v144_v21 = vsub.f32 %v142_v16, %v136_v9  ;;  %s188_s4 = sshll.u32 %s409_s2, 4  ;;  %s190_s23 = sshll.u32 %s473_s6, 4  ;;  %s189_s4 = int_to_ptr.vmem [resolvable:$true] %s188_s4  ;;  %s191_s23 = int_to_ptr.hbm [resolvable:$true] %s190_s23 }
  0x1a   :  { %v109_v2 = vsub.f32 0.0, %v108_v1  ;;  %v140_v18 = vsub.f32 %v138_v11, %v136_v9  ;;  %v141_v20 = vsub.f32 %v139_v15, %v137_v10  ;;  %v145_v22 = vsub.f32 %v143_v17, %v137_v10  ;;  %s410_s25 = smov [#allocation12]   ;;  %s179_s29 = sshll.u32 %s472_s5, 4  ;;  %s180_s29 = int_to_ptr.hbm [resolvable:$true] %s179_s29 }
  0x1b   :  { %v107_v24 = vsub.f32 %v105_v12, %v106_v13  ;;  %v148_v29 = vmul.f32 %v144_v21, %v144_v21  ;;  %s177_s26 = sshll.u32 %s410_s25, 4  ;;  %s178_s26 = int_to_ptr.vmem [resolvable:$true] %s177_s26 }
  0x1c   :  { %v110_v3 = vmul.f32 1.442695, %v109_v2  ;;  %v146_v26 = vmul.f32 %v140_v18, %v140_v18  ;;  %v147_v28 = vmul.f32 %v141_v20, %v141_v20  ;;  %v149_v30 = vmul.f32 %v145_v22, %v145_v22 }
  0x1e   :  { %220 = vpow2.f32 %v110_v3  ;;  %v150_v33 = vadd.f32 %v148_v29, %v146_v26  ;;  %v151_v34 = vadd.f32 %v149_v30, %v147_v28 }
  0x20   :  { %v153_v35 = vadd.f32 %v151_v34, %v150_v33 }
  0x24   :  { %v221_v4 = vpop.eup %220 }
  0x25   :  { %v112_v5 = vadd.f32 1.0, %v221_v4  ;;  %v115_v6 = vmul.f32 -0.5, %v221_v4  ;;  %v118_v14 = vand.u32 2147483647, %v221_v4 }
  0x27   :  { %222 = vlog2.f32 %v112_v5  ;;  %v116_v8 = vadd.f32 1.0, %v115_v6  ;;  %vm119_vm0 = vcmp.lt.f32.partialorder %v118_v14, 0.0004427343 }
  0x29   :  { %v117_v19 = vmul.f32 %v221_v4, %v116_v8 }
  0x2d   :  { %v223_v23 = vpop.eup %222 }
  0x2e   :  { %v114_v25 = vmul.f32 0.6931472, %v223_v23 }
  0x30   :  { %v120_v27 = vsel %vm119_vm0, %v117_v19, %v114_v25 }
  0x31   :  { %v121_v31 = vadd.f32 %v120_v27, %v107_v24 }
  0x33   :  { %v123_v32 = vsel %vm122_vm1, %v121_v31, 0.0 }
  0x34   :  { %124 = vadd.xlane.f32.xlu0 %v123_v32 }
  0x3c   :  { %160 = vadd.xlane.f32.xlu0 %v153_v35 }
  0xa7   :  { %v125_v36 = vpop.xlane.xlu0 %124 }
  0xa8   :  { %v126_v37 = vrot.slane %v125_v36, 4 }
  0xaa   :  { %v127_v38 = vadd.f32 %v126_v37, %v125_v36 }
  0xac   :  { %v128_v39 = vrot.slane %v127_v38, 2 }
  0xae   :  { %v129_v40 = vadd.f32 %v128_v39, %v127_v38 }
  0xaf   :  { %v161_v41 = vpop.xlane.xlu0 %160 }
  0xb0   :  { %v162_v42 = vrot.slane %v161_v41, 4  ;;  %v130_v43 = vrot.slane %v129_v40, 1 }
  0xb2   :  { %v163_v44 = vadd.f32 %v162_v42, %v161_v41  ;;  %v131_v45 = vadd.f32 %v130_v43, %v129_v40 }
  0xb4   :  { %v164_v46 = vrot.slane %v163_v44, 2  ;;  %207 = vpush %v131_v45 }
  0xb6   :  { %v165_v47 = vadd.f32 %v164_v46, %v163_v44 }
  0xb8   :  { %v166_v48 = vrot.slane %v165_v47, 1 }
  0xba   :  { %v167_v49 = vadd.f32 %v166_v48, %v165_v47 }
  0xbc   :  { %209 = vpush %v167_v49 }
  0xe5   :  { %s208_s24 = spop %207 }
  0xe6   :  { %v133_v50 = vstv %s208_s24 }
  0xe7   :  { %135 = vst [vmem:[#allocation13] sm:$0xff] %v133_v50 }
  0xe8   :  { %193 = dma.vmem_to_hbm [thread:$0]  %s189_s4, 128, %s191_s23, [#allocation14]  }
  0xed   :  { %s210_s30 = spop %209 }
  0xee   :  { %v169_v51 = vstv %s210_s30 }
  0xef   :  { %171 = vst [vmem:[#allocation12] sm:$0xff] %v169_v51 }
  0xf0   :  { %182 = dma.vmem_to_hbm [thread:$0]  %s178_s26, 128, %s180_s29, [#allocation5]  }
  0xf1   :  { %398 = dma.done.wait [#allocation5], 128  }
  0xf2   :  { %399 = vsyncadd [#allocation5], 4294967168 }
  0xf3   :  { %400 = dma.done.wait [#allocation14], 128  }
  0xf4   :  { %401 = vsyncadd [#allocation14], 4294967168 }
  0xf5   :  { %202 = vsyncpa [#allocation4], 1 }
  0xf6   :  { %203 = vsyncpa [#allocation7], 1 }
  0xf7   :  { %204 = vsyncpa [#allocation10], 1 }
  0xf8   :  { %205 = vsyncpa [#allocation5], 1 }
  0xf9   :  { %206 = vsyncpa [#allocation14], 1 }

</bundles_post_ra>
